<compile_context>
chip_gen: v7x
topology: tpu7x:2x2x1
jax: 0.10.0
libtpu: 0.0.40
codegen_flags: <defaults>
</compile_context>

<pallas_src>
import jax
import jax.numpy as jnp
from jax.experimental import pallas as pl
from jax.experimental.pallas import tpu as pltpu


def _round_up(x, m):
    return ((x + m - 1) // m) * m


def _ensemble_kernel(x_ref, w_ref, b_ref, o_ref):
    # x_ref: (1, Cin, TILE)   one batch element, all in-channels, pixel tile
    # w_ref: (MC, Cin)        fused weights of all sub-models (VMEM-resident)
    # b_ref: (MC, 1)          fused biases                    (VMEM-resident)
    # o_ref: (1, MC, TILE)    concatenated features, final NCHW layout
    x = x_ref[0]                                  # (Cin, TILE)
    w = w_ref[...]                                # (MC, Cin)
    b = b_ref[...]                                # (MC, 1)
    # K = Cin is tiny, but the MXU matmul is effectively free in this
    # HBM-bound kernel and keeps vld/vst slots for the output stores
    # (the unrolled-FMA alternative spilled the (MC, TILE) accumulator).
    acc = jnp.dot(w, x, preferred_element_type=jnp.float32)   # (MC, TILE) f32
    # Bias: implicit (MC,1) -> (MC,TILE) broadcast add, one VALU pass.
    o_ref[0] = (acc + b.astype(jnp.float32)).astype(o_ref.dtype)


def _pick_tile(hw128, n_batch, mc, cin, in_itemsize, out_itemsize,
               tile_hw=None, target_out_block_bytes=4 << 20,
               vmem_budget_bytes=12 << 20):
    """Pick a 128-aligned pixel-tile (lane axis) size."""
    if tile_hw is not None:
        tile = max(128, (tile_hw // 128) * 128)     # force (8,128)-legal tiles
    else:
        # ~4 MiB output block per step (amortizes per-step pipeline overhead).
        t = target_out_block_bytes // max(1, mc * out_itemsize)
        # Keep double-buffered in+out blocks under the v5e 16 MiB scoped-VMEM
        # default (weights/bias are negligible).
        per_pixel = 2 * (mc * out_itemsize + cin * in_itemsize)
        t = min(t, vmem_budget_bytes // max(1, per_pixel))
        tile = max(128, (t // 128) * 128)
    tile = min(tile, hw128)
    # v7x megacore: keep >= ~4 grid steps so both TensorCores have work.
    while tile > 128 and n_batch * pl.cdiv(hw128, tile) < 4:
        tile = max(128, ((tile // 2) // 128) * 128)
    return tile


def feature_ensemble(x_nchw, weights, biases, *, tile_hw=None, out_dtype=None):
    """x_nchw: (N, Cin, H, W); weights: (M, Cin, Cout); biases: (M, Cout).
    Returns (N, M*Cout, H, W) == torch.cat([conv_m(x) for m in models], dim=1)."""
    N, Cin, H, W = x_nchw.shape
    M, Cin_w, Cout = weights.shape
    assert Cin_w == Cin
    MC = M * Cout
    HW = H * W
    out_dtype = x_nchw.dtype if out_dtype is None else jnp.dtype(out_dtype)

    # Fuse all sub-models: W_all[m*Cout + o, c] = weights[m, c, o].
    w_all = jnp.transpose(weights, (0, 2, 1)).reshape(MC, Cin)
    b_all = biases.reshape(MC, 1).astype(jnp.float32)

    HW128 = _round_up(HW, 128)
    tile = _pick_tile(
        HW128, N, MC, Cin,
        jnp.dtype(x_nchw.dtype).itemsize, jnp.dtype(out_dtype).itemsize,
        tile_hw=tile_hw)

    x3 = x_nchw.reshape(N, Cin, HW)              # free reshape (contiguous)
    if HW128 != HW:
        # At most 127 pixels of padding (128-alignment only, never tile-align).
        # TODO(synk): handle this <=127-pixel tail fully in-kernel (masked
        #             store) so the wrapper pad + output slice disappear too.
        x3 = jnp.pad(x3, ((0, 0), (0, 0), (0, HW128 - HW)))

    grid = (N, pl.cdiv(HW128, tile))             # partial tail blocks are OK

    out = pl.pallas_call(
        _ensemble_kernel,
        out_shape=jax.ShapeDtypeStruct((N, MC, HW128), out_dtype),
        grid_spec=pltpu.PrefetchScalarGridSpec(
            num_scalar_prefetch=0,
            grid=grid,
            in_specs=[
                pl.BlockSpec((1, Cin, tile), lambda n, p: (n, 0, p)),
                pl.BlockSpec((MC, Cin), lambda n, p: (0, 0)),   # resident
                pl.BlockSpec((MC, 1), lambda n, p: (0, 0)),     # resident
            ],
            out_specs=pl.BlockSpec((1, MC, tile), lambda n, p: (n, 0, p)),
        ),
        compiler_params=pltpu.CompilerParams(
            dimension_semantics=("parallel", "parallel")
        ),
    )(x3, w_all, b_all)

    if HW128 != HW:
        out = out[:, :, :HW]
    return out.reshape(N, MC, H, W)              # free reshape (contiguous)


def _reference(x_nchw, weights, biases):
    # pure-JAX reference: per-model 1x1 conv, concat along channels (dim 1)
    feats = [
        jnp.einsum("nchw,co->nohw", x_nchw, weights[m])
        + biases[m][None, :, None, None]
        for m in range(weights.shape[0])
    ]
    return jnp.concatenate(feats, axis=1)


if __name__ == "__main__":
    key = jax.random.PRNGKey(0)
    kx, kw, kb = jax.random.split(key, 3)

    N, Cin, H, W = 2, 4, 16, 16   # input, NCHW like PyTorch
    M, Cout = 3, 8                # 3 sub-models, 8 feature channels each

    x = jax.random.normal(kx, (N, Cin, H, W), dtype=jnp.float32)
    weights = jax.random.normal(kw, (M, Cin, Cout), dtype=jnp.float32) * 0.1
    biases = jax.random.normal(kb, (M, Cout), dtype=jnp.float32) * 0.1

    out = feature_ensemble(x, weights, biases)
    out = jax.block_until_ready(out)

    ref = _reference(x, weights, biases)
    assert out.shape == (N, M * Cout, H, W), out.shape
    assert jnp.allclose(out, ref, atol=1e-5, rtol=1e-5), "mismatch vs reference"

    # Tail-handling check: H*W not a multiple of 128 (pad is <= 127 pixels).
    Ht, Wt = 10, 10
    xt = jax.random.normal(kx, (N, Cin, Ht, Wt), dtype=jnp.float32)
    out_t = jax.block_until_ready(feature_ensemble(xt, weights, biases))
    ref_t = _reference(xt, weights, biases)
    assert out_t.shape == (N, M * Cout, Ht, Wt), out_t.shape
    assert jnp.allclose(out_t, ref_t, atol=1e-5, rtol=1e-5), "tail mismatch"

    print("KERNEL_OK")
</pallas_src>

<mosaic_0001>
module attributes {stable_mosaic.version = 11 : i64} {
  func.func @_ensemble_kernel(%arg0: i32, %arg1: i32, %arg2: memref<1x4x128xf32, #tpu.memory_space<vmem>>, %arg3: memref<24x4xf32, #tpu.memory_space<vmem>>, %arg4: memref<24x1xf32, #tpu.memory_space<vmem>>, %arg5: memref<1x24x128xf32, #tpu.memory_space<vmem>>) attributes {dimension_semantics = [#tpu.dimension_semantics<parallel>, #tpu.dimension_semantics<parallel>], iteration_bounds = array<i64: 2, 2>, scalar_prefetch = 0 : i64, scratch_operands = 0 : i64, tpu.core_type = #tpu.core_type<tc>, window_params = [{transform_indices = @transform_0, window_bounds = array<i64: 1, 4, 128>}, {pipeline_mode = #tpu.pipeline_mode<synchronous>, transform_indices = @transform_1, window_bounds = array<i64: 24, 4>}, {pipeline_mode = #tpu.pipeline_mode<synchronous>, transform_indices = @transform_2, window_bounds = array<i64: 24, 1>}, {transform_indices = @transform_3, window_bounds = array<i64: 1, 24, 128>}]} {
    %c0 = arith.constant 0 : index
    %c0_0 = arith.constant 0 : index
    %c0_1 = arith.constant 0 : index
    %0 = vector.load %arg2[%c0, %c0_0, %c0_1] : memref<1x4x128xf32, #tpu.memory_space<vmem>>, vector<1x4x128xf32>
    %1 = vector.shape_cast %0 : vector<1x4x128xf32> to vector<4x128xf32>
    %c0_2 = arith.constant 0 : index
    %c0_3 = arith.constant 0 : index
    %2 = vector.load %arg3[%c0_2, %c0_3] : memref<24x4xf32, #tpu.memory_space<vmem>>, vector<24x4xf32>
    %c0_4 = arith.constant 0 : index
    %c0_5 = arith.constant 0 : index
    %3 = vector.load %arg4[%c0_4, %c0_5] : memref<24x1xf32, #tpu.memory_space<vmem>>, vector<24x1xf32>
    %cst = arith.constant dense<0.000000e+00> : vector<24x128xf32>
    %4 = tpu.matmul %2, %1, %cst {dimension_numbers = #tpu.dot_dimension_numbers<[1], [0], [0], [1], [0, 0, 1, 1], [], []>} : vector<24x4xf32>, vector<4x128xf32>, vector<24x128xf32> -> vector<24x128xf32>
    %5 = vector.broadcast %3 : vector<24x1xf32> to vector<24x128xf32>
    %6 = arith.addf %4, %5 : vector<24x128xf32>
    %c0_6 = arith.constant 0 : index
    %c0_7 = arith.constant 0 : index
    %c0_8 = arith.constant 0 : index
    %7 = vector.load %arg5[%c0_6, %c0_7, %c0_8] : memref<1x24x128xf32, #tpu.memory_space<vmem>>, vector<1x24x128xf32>
    %8 = vector.shape_cast %7 : vector<1x24x128xf32> to vector<24x128xf32>
    %9 = vector.shape_cast %6 : vector<24x128xf32> to vector<1x24x128xf32>
    tpu.vector_store %arg5[%c0_6, %c0_7, %c0_8], %9 {strides = array<i32>} : memref<1x24x128xf32, #tpu.memory_space<vmem>>, vector<1x24x128xf32>,
    return
  }
  func.func @transform_0(%arg0: i32, %arg1: i32) -> (i32, i32, i32) {
    %c0_i32 = arith.constant 0 : i32
    %c0_i32_0 = arith.constant 0 : i32
    return %arg0, %c0_i32, %arg1 : i32, i32, i32
  }
  func.func @transform_1(%arg0: i32, %arg1: i32) -> (i32, i32) {
    %c0_i32 = arith.constant 0 : i32
    %c0_i32_0 = arith.constant 0 : i32
    %c0_i32_1 = arith.constant 0 : i32
    return %c0_i32, %c0_i32_0 : i32, i32
  }
  func.func @transform_2(%arg0: i32, %arg1: i32) -> (i32, i32) {
    %c0_i32 = arith.constant 0 : i32
    %c0_i32_0 = arith.constant 0 : i32
    %c0_i32_1 = arith.constant 0 : i32
    return %c0_i32, %c0_i32_0 : i32, i32
  }
  func.func @transform_3(%arg0: i32, %arg1: i32) -> (i32, i32, i32) {
    %c0_i32 = arith.constant 0 : i32
    %c0_i32_0 = arith.constant 0 : i32
    return %arg0, %c0_i32, %arg1 : i32, i32, i32
  }
}

</mosaic_0001>

<bundles_post_ra>
// kernel: tpu_custom_call.1
= control target key start
LH: loop header
LB: loop body
LE: loop exit
PB: predicated region body
PF: predicated region fallthrough
CT: control target
= control target key end

     0   :  { %8 = vsyncpa [#allocation3], 0  ;;  %s805_s0 = inlined_call_operand.vmem [shape: f32[2,4,256], index: 0, kind: input, shape index: {}]   ;;  %s806_s1 = inlined_call_operand.vmem [shape: f32[24,4], index: 1, kind: input, shape index: {}]   ;;  %s807_s2 = inlined_call_operand.vmem [shape: f32[24,1], index: 2, kind: input, shape index: {}]   ;;  %s808_s3 = inlined_call_operand.hbm [shape: f32[2,24,256], index: 3, kind: output, shape index: {}]  }
   0x1   :  { %10 = vsyncpa [#allocation3 + $0x1], 0  ;;  %s644_s12 = smov 0   ;;  %s646_s13 = smov 0  }
   0x2   :  { %s648_s14 = smov 0   ;;  %s650_s15 = smov 0  }
   0x3   :  { %s652_s16 = smov 0   ;;  %s654_s17 = smov 0  }
   0x4   :  { %s656_s18 = smov 0   ;;  %s658_s19 = smov 0  }
   0x5 LB: > { %s409_s20 = sadd.s32 4294967295, %s615_s19   ;;  %s410_s21 = sadd.s32 4294967294, %s615_s19   ;;  %s615_s19 = sphi %s658_s19, %s16_s19   ;;  %s611_s18 = sphi %s656_s18, %s817_s18   ;;  %s607_s17 = sphi %s654_s17, %s816_s17   ;;  %s603_s16 = sphi %s652_s16, %s815_s16   ;;  %s599_s15 = sphi %s650_s15, %s814_s15   ;;  %s595_s14 = sphi %s648_s14, %s813_s14   ;;  %s591_s13 = sphi %s646_s13, %s812_s13   ;;  %s587_s12 = sphi %s644_s12, %s811_s12  }
   0x6   : > { %s25_s22 = sadd.s32 1, %s607_s17  ;;  %s28_s23 = sadd.s32 1, %s611_s18 }
   0x7   : > { %p26_p0 = scmp.ge.s32.totalorder %s25_s22, 2  ;;  %p117_p1 = scmp.ne.s32.totalorder %s595_s14, %s591_s13 }
   0x8   : > { %p118_p2 = scmp.eq.s32.totalorder %s409_s20, 3  ;;  %p123_p5 = scmp.ne.s32.totalorder %s591_s13, %s587_s12 }
   0x9   : > { %s819_s22 = smov (%p26_p0, %s25_s22), 0  ;;  %s821_s23 = smov (!%p26_p0, %s28_s23), %s611_s18 }
   0xa   : > { %s103_s24 = ssub.s32 %s607_s17, %s819_s22  ;;  %p695_p3 = por %p118_p2, %p117_p1 }
   0xb   : > { %p30_p4 = scmp.ge.s32.totalorder %s821_s23, 2  ;;  %p124_p6 = scmp.eq.s32.totalorder %s410_s21, 3 }
   0xc   : > { %p413_p7 = scmp.ge.s32.totalorder %s615_s19, 1  ;;  %p159_p9 = scmp.lt.s32.totalorder %s615_s19, 5 }
   0xd   : > { %s823_s23 = smov (%p30_p4, %s821_s23), 0  ;;  %p704_p8 = por %p124_p6, %p123_p5 }
   0xe   : > { %s102_s27 = ssub.s32 %s611_s18, %s823_s23  ;;  %s107_s28 = sadd.s32 1, %s595_s14 }
   0xf   : > { %s104_s29 = sor.u32 %s103_s24, %s102_s27  ;;  %p160_p10 = pnand %p413_p7, %p159_p9 }
  0x10   : > { %p105_p11 = scmp.eq.s32.totalorder %s104_s29, 0  ;;  %p186_p12 = scmp.lt.s32.totalorder (!%p160_p10), %s603_s16, 1  ;;  %v617_v0 = vmov (!%p160_p10), 0.0   ;;  %v198_v1 = vld [vmem:[%s807_s2] sm:$0xff] (!%p160_p10)  ;;  %vm618_vm0 = vmmov (!%p160_p10), 0   ;;  %v200_v2 = vld [vmem:[%s807_s2 + $0x10] sm:$0xff] (!%p160_p10) }
  0x11   : > { %163 = sbr.rel (%p160_p10) target bundleno = 266 (0x10a), region = 32  ;;  %p188_p13 = scmp.lt.s32.totalorder (!%p160_p10), %s599_s15, 1  ;;  %427 = vmatprep.subr.mxu0 (!%p160_p10), %v617_v0  ;;  %438 = vmatprep.subr.mxu1 (!%p160_p10), %v617_v0  ;;  %v619_v3 = vmov (!%p160_p10), 0   ;;  %v199_v4 = vld [vmem:[%s807_s2 + $0x8] sm:$0xff] (!%p160_p10)  ;;  %vm226_vm1 = vcmask (!%p160_p10), 1043456   ;;  %v195_v5 = vld [vmem:[%s806_s1] sm:$0xff] (!%p160_p10) }
  0x12   : > { %s713_s30 = scalar_select %p105_p11, %s595_s14, %s107_s28  }
  0x13   : > { %429 = vmatprep.mubr.msk.f32.mxu0 (!%p160_p10), %vm618_vm0, %v617_v0  ;;  %432 = vmatprep.mubr.msk.f32.mxu1 (!%p160_p10), %vm618_vm0, %v617_v0  ;;  %vm216_vm2 = vcmask (!%p160_p10), 31744   ;;  %v196_v6 = vld [vmem:[%s806_s1 + $0x8] sm:$0xff] (!%p160_p10)  ;;  %v197_v8 = vld [vmem:[%s806_s1 + $0x10] sm:$0xff] (!%p160_p10) }
  0x14   : > { %519 = vset.pattern.permute.xlu0 (!%p160_p10), %v619_v3  ;;  %520 = vset.pattern.permute.xlu1 (!%p160_p10), %v619_v3 }
  0x15   : > { %203 = vperm.xlu0 (!%p160_p10), %519, %v198_v1   ;;  %213 = vperm.xlu1 (!%p160_p10), %520, %v200_v2  }
  0x18   : > { %s187_s6 = scalar_select %p186_p12, %s603_s16, 1 }
  0x19   : > { %s189_s9 = scalar_select %p188_p13, %s599_s15, 1  ;;  %208 = vperm.xlu0 %519, %v199_v4  }
  0x1a   : > { %s414_s10 = sshll.u32 %s187_s6, 1  ;;  %s620_s6 = smov [#allocation2]  }
  0x1b   : > { %s191_s11 = sadd.s32 %s414_s10, %s189_s9  ;;  %s183_s10 = sand.u32 1, %s591_s13  }
  0x1c   : > { %s415_s24 = sshll.u32 %s191_s11, 2  ;;  %s441_s11 = smul.u32 6, %s603_s16 }
  0x1d   : > { %s193_s29 = scalar_lea.vmem %s805_s0, %s415_s24  ;;  %s440_s20 = smul.u32 24, %s183_s10 }
  0x1e   : > { %v194_v7 = vld [vmem:[%s193_s29] sm:$0xf]  ;;  %s325_s21 = sadd.s32 %s599_s15, %s441_s11  ;;  %s753_s4 = scalar_lea.sflag [#allocation3], %s183_s10 }
  0x1f   : > { %428 = vmatpush3.msk.msra.mxu0 %vm226_vm1, %v194_v7  ;;  %439 = vmatpush3.msk.msra.mxu1 %vm226_vm1, %v194_v7  ;;  %s185_s24 = scalar_lea.vmem [#allocation2], %s440_s20  ;;  %s420_s28 = sshll.u32 %s325_s21, 7 }
  0x20   : > { %430 = vmatmul.mubr.msk.f32.vlgmr.msra.gmra.mrb[0].mxu0 %vm216_vm2, %v195_v5  ;;  %433 = vmatmul.mubr.msk.f32.vlgmr.msra.gmra.mrb[0].mxu1 %vm216_vm2, %v196_v6  ;;  %s328_s27 = sshll.u32 %s185_s24, 4  ;;  %s751_s29 = scalar_lea.hbm %s808_s3, %s420_s28  ;;  %s746_s27 = int_to_ptr.vmem [resolvable:$true] %s328_s27 }
  0x21   : > { %435 = vmatprep.mubr.msk.f32.mxu1 %vm618_vm0, %v617_v0  ;;  %s521_s5 = scalar_lea.vmem %s746_s27, 384  ;;  %s525_s7 = sshll.u32 %s620_s6, 4  ;;  %s526_s7 = int_to_ptr.vmem [resolvable:$false] %s525_s7 }
  0x22   : > { %p522_p0 = scmp.ne.s32.totalorder %s746_s27, %s521_s5  ;;  %s527_s8 = scalar_lea.vmem %s526_s7, 768 }
  0x23   : > { %p528_p4 = scmp.lt.s32.totalorder %s746_s27, %s526_s7  ;;  %p529_p5 = scmp.lt.s32.totalorder %s527_s8, %s521_s5 }
  0x24   : > { %436 = vmatmul.mubr.msk.f32.gmra.mrb[2].mxu1 %vm216_vm2, %v197_v8  ;;  %p523_p1 = pnand %p522_p0, %p695_p3 }
  0x25   : > { %p530_p6 = por %p529_p5, %p528_p4 }
  0x26   : > { %p524_p2 = pneg %p523_p1 }
  0x28   : > { %p531_p7 = pnand %p530_p6, %p524_p2 }
  0x94   : > { %v204_v9 = vpop.permute.xlu0 %203  ;;  %v214_v17 = vpop.permute.xlu1 %213 }
  0x98   : > { %v209_v10 = vpop.permute.xlu0 %208 }
  0xf3   : > { %v296_v11 = vpop.f32.mrb[0].mxu0  ;;  %v301_v12 = vpop.f32.mrb[0].mxu1 }
  0xf4   : > { %v297_v13 = vadd.f32 %v296_v11, %v204_v9  ;;  %v302_v14 = vadd.f32 %v301_v12, %v209_v10  ;;  %v434_v15 = vpop.f32.mrb[1].mxu1  ;;  %v431_v16 = vpop.f32.mrb[1].mxu0 }
  0xf6   : > { %310 = vst [vmem:[%s185_s24] sm:$0xff] %v297_v13  ;;  %311 = vst [vmem:[%s185_s24 + $0x8] sm:$0xff] %v302_v14 }
  0xf7   : > { %v306_v18 = vpop.f32.mrb[2].mxu1 }
  0xf8   : > { %v307_v19 = vadd.f32 %v306_v18, %v214_v17  ;;  %v437_v20 = vpop.f32.mrb[3].mxu1 }
  0xfa   : > { %312 = vst [vmem:[%s185_s24 + $0x10] sm:$0xff] %v307_v19 }
  0xfb   : > { %534 = shalt.err (!%p531_p7)
}
  0xfc   : > { %s535_s9 = scalar_lea.hbm %s751_s29, 384  ;;  %s539_s20 = scalar_lea.hbm %s808_s3, 1536 }
  0xfd   : > { %p536_p9 = scmp.ne.s32.totalorder %s751_s29, %s535_s9  ;;  %p540_p12 = scmp.lt.u32.totalorder %s751_s29, %s808_s3 }
  0xfe   : > { %p541_p13 = scmp.lt.u32.totalorder %s539_s20, %s535_s9  ;;  %p543_p1 = scmp.lt.u32.totalorder %s535_s9, %s751_s29 }
  0xff   : > { %p537_p10 = pnand %p536_p9, %p695_p3 }
 0x100   : > { %p542_p0 = por %p541_p13, %p540_p12 }
 0x101   : > { %p538_p11 = pneg %p537_p10 }
 0x102   : > { %p544_p2 = por %p543_p1, %p542_p0 }
 0x104   : > { %p545_p4 = pnand %p544_p2, %p538_p11 }
 0x106   : > { %548 = shalt.err (!%p545_p4)
}
 0x107   : > { %s621_s28 = smov 128   ;;  %s622_s15 = smov 256  }
 0x108   : > { %s623_s16 = smov 8  }
 0x109   : > { %442 = dma.vmem_to_hbm [thread:$0]  (%p695_p3), %s746_s27, 384, %s751_s29, %s753_s4, %s621_s28, %s622_s15, %s623_s16  }
 0x10a PF: > { %p448_p5 = scmp.ge.s32.totalorder %s615_s19, 2  ;;  %s343_s5 = sand.u32 1, %s587_s12  }
 0x10b   : > { %s344_s6 = scalar_lea.sflag [#allocation3], %s343_s5 }
 0x10c   : > { %p445_p6 = pnand %p448_p5, %p704_p8 }
 0x10e   : > { %582 = dma.done.wait (!%p445_p6), %s344_s6, 384  }
 0x10f   : > { %584 = vsyncadd (!%p445_p6), %s344_s6, 4294966912  ;;  %s16_s19 = sadd.s32 1, %s615_s19   ;;  %s811_s12 = smov %s591_s13 }
 0x110   : > { %p13_p7 = scmp.ge.s32.totalorder %s16_s19, 6   ;;  %s812_s13 = smov %s595_s14 }
 0x111   : > { %s813_s14 = smov %s713_s30  ;;  %s814_s15 = smov %s607_s17 }
 0x112   : > { %s815_s16 = smov %s611_s18  ;;  %s816_s17 = smov %s819_s22 }
 0x113   : > { %s817_s18 = smov %s823_s23  ;;  %15 = sbr.rel (!%p13_p7) target bundleno = 5 (0x5), region = 67 }
 0x11a   :  { %349 = vsyncpa [#allocation3], 1 }
 0x11b   :  { %351 = vsyncpa [#allocation3 + $0x1], 1 }

</bundles_post_ra>
